<compile_context>
chip_gen: v5e
topology: v5e:2x2
jax: 0.10.0
libtpu: 0.0.40
codegen_flags: <defaults>
</compile_context>

<pallas_src>
import math

import jax
import jax.numpy as jnp
from jax.experimental import pallas as pl
from jax.experimental.pallas import tpu as pltpu

_VMEM_BUDGET = 40 << 20      # tile-selection budget (fits v7x's 64 MiB VMEM)
_VMEM_LIMIT_CAP = 48 << 20   # scoped-VMEM request ceiling (safe on all gens)


def _round_up(x, m):
    return (x + m - 1) // m * m


def _vmem_bytes(tb, tk, d_pad, t_pad):
    """Per-step VMEM footprint for the chosen tiling."""
    return (2 * tb * tk * 2            # x tile, double-buffered bf16
            + 2 * tk * d_pad * 2       # w_enc tile, double-buffered bf16
            + d_pad * t_pad * 2        # w_heads, single-buffered bf16
            + d_pad * 4 + t_pad * 4    # biases, single-buffered f32
            + 2 * tb * t_pad * 4       # output tile, double-buffered f32
            + tb * d_pad * 4)          # f32 accumulator scratch


def _const_block_spec(shape):
    """Grid-invariant input: single-buffer (double-buffering buys nothing)."""
    idx = lambda b, k: (0,) * len(shape)
    try:
        return pl.BlockSpec(shape, idx, pipeline_mode=pl.Buffered(1))
    except (TypeError, AttributeError):   # older jax without pipeline_mode
        return pl.BlockSpec(shape, idx)


def _attribute_predictor_kernel(x_ref, we_ref, be_ref, wh_ref, bh_ref,
                                o_ref, acc_ref):
    """Tiled fused forward.

    Grid: (batch tiles, K tiles).  K (=C*H*W) is the reduction axis of the
    encoder matmul; the (tb, D_pad) f32 accumulator lives in VMEM scratch.
    """
    k = pl.program_id(1)

    @pl.when(k == 0)
    def _init():
        acc_ref[...] = jnp.zeros_like(acc_ref)

    # Encoder partial matmul: (tb, tk) bf16 x (tk, D_pad) bf16 -> f32 acc.
    acc_ref[...] += jnp.dot(x_ref[...], we_ref[...],
                            preferred_element_type=jnp.float32)

    @pl.when(k == pl.num_programs(1) - 1)
    def _epilogue():
        # Bias + ReLU in f32 (VPU), then fused attribute heads on the MXU.
        feat = jnp.maximum(acc_ref[...] + be_ref[...], 0.0)
        out = jnp.dot(feat.astype(wh_ref.dtype), wh_ref[...],
                      preferred_element_type=jnp.float32)
        o_ref[...] = out + bh_ref[...]


def prepare_params(params):
    """One-time cast/pad of the static weights (hoisted out of forward).

    Doing this once per model instead of per call removes an extra HBM
    read+write of w_enc (the largest array) from every forward.
    """
    w_enc, b_enc, w_heads, b_heads = params
    K, D = w_enc.shape
    T = w_heads.shape[1]

    # D rounded to 256 when D >= 256 to fill the 256x256 MXU on v6e/v7x;
    # 128 otherwise (full push on v5e, keeps small-D padding traffic low).
    d_pad = _round_up(D, 256) if D >= 256 else _round_up(D, 128)
    t_pad = _round_up(T, 128)

    # Reduction tile: as large as VMEM comfortably allows (long DMAs for the
    # mem-bound w_enc stream), capped at 4096 and so that the double-buffered
    # (tk, d_pad) bf16 tile stays <= ~24 MiB.
    tk = min(_round_up(K, 128), 4096,
             max(128, ((6 << 20) // d_pad) // 128 * 128))
    k_pad = _round_up(K, tk)

    we_p = jnp.pad(w_enc.astype(jnp.bfloat16), ((0, k_pad - K), (0, d_pad - D)))
    be_p = jnp.pad(b_enc.astype(jnp.float32), (0, d_pad - D)).reshape(1, d_pad)
    wh_p = jnp.pad(w_heads.astype(jnp.bfloat16), ((0, d_pad - D), (0, t_pad - T)))
    bh_p = jnp.pad(b_heads.astype(jnp.float32), (0, t_pad - T)).reshape(1, t_pad)
    # TODO(synk): fp8 w_enc/w_heads for v7x's fp8 MXU (halves dominant HBM stream).

    return dict(we=we_p, be=be_p, wh=wh_p, bh=bh_p,
                K=K, D=D, T=T, k_pad=k_pad, d_pad=d_pad, t_pad=t_pad, tk=tk)


def attribute_predictor_forward(x_nchw, prepared, attribute_sizes):
    """Runs the fused, tiled Pallas kernel and splits logits per attribute."""
    B = x_nchw.shape[0]
    K = math.prod(x_nchw.shape[1:])          # C*H*W
    assert K == prepared["K"], (K, prepared["K"])
    tk, k_pad = prepared["tk"], prepared["k_pad"]
    d_pad, t_pad = prepared["d_pad"], prepared["t_pad"]

    # Batch tile.  Prefer a single batch tile (w_enc streamed from HBM exactly
    # once); fall back to 512/256-row tiles only for very large batches where
    # each tile is compute-bound and megacore splitting of the "parallel"
    # batch axis actually pays for the duplicated w_enc stream.
    b_min = max(16, _round_up(B, 16))        # bf16 sublane-packed rows (not 128)
    cands = [b_min] if b_min <= 512 else [512, 256]
    cands += [t for t in (256, 128, 64, 32, 16) if t < cands[-1]]
    tb = next((t for t in cands
               if _vmem_bytes(t, tk, d_pad, t_pad) <= _VMEM_BUDGET), 16)
    b_pad = _round_up(B, tb)

    x_flat = x_nchw.reshape(B, K)            # x.view(B, -1)
    x_p = jnp.pad(x_flat.astype(jnp.bfloat16), ((0, b_pad - B), (0, k_pad - K)))

    grid = (b_pad // tb, k_pad // tk)
    n_btiles = grid[0]

    vmem_need = _vmem_bytes(tb, tk, d_pad, t_pad)
    vmem_limit = int(min(_VMEM_LIMIT_CAP, max(16 << 20, int(vmem_need * 1.25))))

    cost = pl.CostEstimate(
        flops=2 * b_pad * k_pad * d_pad + 2 * b_pad * d_pad * t_pad,
        transcendentals=0,
        bytes_accessed=(x_p.size * 2
                        + prepared["we"].size * 2 * n_btiles  # per batch tile
                        + prepared["wh"].size * 2
                        + prepared["be"].size * 4 + prepared["bh"].size * 4
                        + b_pad * t_pad * 4),
    )

    out = pl.pallas_call(
        _attribute_predictor_kernel,
        out_shape=jax.ShapeDtypeStruct((b_pad, t_pad), jnp.float32),
        grid_spec=pltpu.PrefetchScalarGridSpec(
            num_scalar_prefetch=0,
            grid=grid,
            in_specs=[
                pl.BlockSpec((tb, tk), lambda b, k: (b, k)),        # x
                pl.BlockSpec((tk, d_pad), lambda b, k: (k, 0)),     # w_enc
                _const_block_spec((1, d_pad)),                      # b_enc
                _const_block_spec((d_pad, t_pad)),                  # w_heads
                _const_block_spec((1, t_pad)),                      # b_heads
            ],
            out_specs=pl.BlockSpec((tb, t_pad), lambda b, k: (b, 0)),
            scratch_shapes=[pltpu.VMEM((tb, d_pad), jnp.float32)],
        ),
        compiler_params=pltpu.CompilerParams(
            dimension_semantics=("parallel", "arbitrary"),
            vmem_limit_bytes=vmem_limit),
        cost_estimate=cost,
    )(x_p, prepared["we"], prepared["be"], prepared["wh"], prepared["bh"])

    # Drop padding, then split the fused head output back into the
    # per-attribute list the PyTorch module returns.
    out = out[:B, :prepared["T"]]
    outputs, off = [], 0
    for size in attribute_sizes:
        outputs.append(out[:, off:off + size])
        off += size
    return outputs


def init_params(key, in_dim, encoder_dim, attribute_sizes):
    """Deterministic parameter init mirroring the module's __init__.

    Attribute heads: kaiming_normal_(nonlinearity='relu') on weights
    (std = sqrt(2 / fan_in), fan_in = encoder_dim), zero biases.
    Encoder Linear: kaiming-normal-style init as well (encoder is synthetic).
    Weights are stored transposed, i.e. (in, out), for right-multiplication.
    """
    k_enc, *k_heads = jax.random.split(key, 1 + len(attribute_sizes))

    enc_std = math.sqrt(2.0 / in_dim)
    w_enc = (enc_std * jax.random.normal(k_enc, (in_dim, encoder_dim))).astype(jnp.float32)
    b_enc = jnp.zeros((encoder_dim,), jnp.float32)

    head_std = math.sqrt(2.0 / encoder_dim)
    head_ws = []
    for kh, size in zip(k_heads, attribute_sizes):
        # PyTorch weight shape is (size, encoder_dim); store as (encoder_dim, size).
        head_ws.append((head_std * jax.random.normal(kh, (encoder_dim, size))).astype(jnp.float32))
    w_heads = jnp.concatenate(head_ws, axis=1)                     # (D, sum(sizes))
    b_heads = jnp.zeros((w_heads.shape[1],), jnp.float32)          # zeros_ on every bias

    return w_enc, b_enc, w_heads, b_heads


def reference_forward(x_nchw, params, attribute_sizes):
    """Pure-JAX reference mirroring the kernel's bf16-in / f32-accumulate path."""
    w_enc, b_enc, w_heads, b_heads = params
    B = x_nchw.shape[0]
    hi = jax.lax.Precision.HIGHEST
    x = x_nchw.reshape(B, -1).astype(jnp.bfloat16).astype(jnp.float32)
    we = w_enc.astype(jnp.bfloat16).astype(jnp.float32)
    wh = w_heads.astype(jnp.bfloat16).astype(jnp.float32)
    feat = jnp.maximum(jnp.dot(x, we, precision=hi) + b_enc, 0.0)
    feat = feat.astype(jnp.bfloat16).astype(jnp.float32)
    out = jnp.dot(feat, wh, precision=hi) + b_heads
    outputs, off = [], 0
    for size in attribute_sizes:
        outputs.append(out[:, off:off + size])
        off += size
    return outputs


if __name__ == "__main__":
    # Small shapes consistent with the module's forward:
    #   x: (batch=2, channels=4, spatial=16x16), encoder output dim = 32,
    #   attribute_sizes = [3, 5, 7]  -> list of logits (2,3), (2,5), (2,7)
    B, C, H, W = 2, 4, 16, 16
    encoder_dim = 32
    attribute_sizes = [3, 5, 7]

    key = jax.random.PRNGKey(0)
    k_x, k_p = jax.random.split(key)
    x = jax.random.normal(k_x, (B, C, H, W), dtype=jnp.float32)
    params = init_params(k_p, C * H * W, encoder_dim, attribute_sizes)
    prepared = prepare_params(params)     # one-time weight cast/pad (hoisted)

    outputs = attribute_predictor_forward(x, prepared, attribute_sizes)
    outputs = [jax.block_until_ready(o) for o in outputs]

    # Verify against the precision-matched pure-JAX reference.
    refs = reference_forward(x, params, attribute_sizes)
    for o, r, size in zip(outputs, refs, attribute_sizes):
        assert o.shape == (B, size), (o.shape, size)
        assert jnp.allclose(o, r, atol=1e-2, rtol=1e-2), "mismatch vs reference"

    print("KERNEL_OK")
</pallas_src>

<mosaic_0001>
module attributes {stable_mosaic.version = 11 : i64} {
  func.func @_attribute_predictor_kernel(%arg0: i32, %arg1: i32, %arg2: memref<16x1024xbf16, #tpu.memory_space<vmem>>, %arg3: memref<1024x128xbf16, #tpu.memory_space<vmem>>, %arg4: memref<1x128xf32, #tpu.memory_space<vmem>>, %arg5: memref<128x128xbf16, #tpu.memory_space<vmem>>, %arg6: memref<1x128xf32, #tpu.memory_space<vmem>>, %arg7: memref<16x128xf32, #tpu.memory_space<vmem>>, %arg8: memref<16x128xf32, #tpu.memory_space<vmem>>) attributes {dimension_semantics = [#tpu.dimension_semantics<parallel>, #tpu.dimension_semantics<arbitrary>], iteration_bounds = array<i64: 1, 1>, scalar_prefetch = 0 : i64, scratch_operands = 1 : i64, tpu.core_type = #tpu.core_type<tc>, window_params = [{transform_indices = @transform_0, window_bounds = array<i64: 16, 1024>}, {transform_indices = @transform_1, window_bounds = array<i64: 1024, 128>}, {pipeline_mode = #tpu.pipeline_mode<synchronous>, transform_indices = @transform_2, window_bounds = array<i64: 1, 128>}, {pipeline_mode = #tpu.pipeline_mode<synchronous>, transform_indices = @transform_3, window_bounds = array<i64: 128, 128>}, {pipeline_mode = #tpu.pipeline_mode<synchronous>, transform_indices = @transform_4, window_bounds = array<i64: 1, 128>}, {transform_indices = @transform_5, window_bounds = array<i64: 16, 128>}]} {
    %c0_i32 = arith.constant 0 : i32
    %0 = arith.cmpi eq, %arg1, %c0_i32 : i32
    %1 = arith.extui %0 : i1 to i32
    %c0_i32_0 = arith.constant 0 : i32
    %2 = arith.cmpi ne, %1, %c0_i32_0 : i32
    scf.if %2 {
      %cst_10 = arith.constant 0.000000e+00 : f32
      %12 = vector.broadcast %cst_10 : f32 to vector<16x128xf32>
      %c0_11 = arith.constant 0 : index
      %c0_12 = arith.constant 0 : index
      %13 = vector.load %arg8[%c0_11, %c0_12] : memref<16x128xf32, #tpu.memory_space<vmem>>, vector<16x128xf32>
      tpu.vector_store %arg8[%c0_11, %c0_12], %12 {strides = array<i32>} : memref<16x128xf32, #tpu.memory_space<vmem>>, vector<16x128xf32>,
    } else {
    }
    %c0 = arith.constant 0 : index
    %c0_1 = arith.constant 0 : index
    %3 = vector.load %arg8[%c0, %c0_1] : memref<16x128xf32, #tpu.memory_space<vmem>>, vector<16x128xf32>
    %c0_2 = arith.constant 0 : index
    %c0_3 = arith.constant 0 : index
    %4 = vector.load %arg2[%c0_2, %c0_3] : memref<16x1024xbf16, #tpu.memory_space<vmem>>, vector<16x1024xbf16>
    %c0_4 = arith.constant 0 : index
    %c0_5 = arith.constant 0 : index
    %5 = vector.load %arg3[%c0_4, %c0_5] : memref<1024x128xbf16, #tpu.memory_space<vmem>>, vector<1024x128xbf16>
    %cst = arith.constant dense<0.000000e+00> : vector<16x128xf32>
    %6 = tpu.matmul %4, %5, %cst {dimension_numbers = #tpu.dot_dimension_numbers<[1], [0], [0], [1], [0, 0, 1, 1], [], []>} : vector<16x1024xbf16>, vector<1024x128xbf16>, vector<16x128xf32> -> vector<16x128xf32>
    %7 = arith.addf %3, %6 : vector<16x128xf32>
    %c0_6 = arith.constant 0 : index
    %c0_7 = arith.constant 0 : index
    %8 = vector.load %arg8[%c0_6, %c0_7] : memref<16x128xf32, #tpu.memory_space<vmem>>, vector<16x128xf32>
    tpu.vector_store %arg8[%c0_6, %c0_7], %7 {strides = array<i32>} : memref<16x128xf32, #tpu.memory_space<vmem>>, vector<16x128xf32>,
    %c0_i32_8 = arith.constant 0 : i32
    %9 = arith.cmpi eq, %arg1, %c0_i32_8 : i32
    %10 = arith.extui %9 : i1 to i32
    %c0_i32_9 = arith.constant 0 : i32
    %11 = arith.cmpi ne, %10, %c0_i32_9 : i32
    scf.if %11 {
      %c0_10 = arith.constant 0 : index
      %c0_11 = arith.constant 0 : index
      %12 = vector.load %arg8[%c0_10, %c0_11] : memref<16x128xf32, #tpu.memory_space<vmem>>, vector<16x128xf32>
      %c0_12 = arith.constant 0 : index
      %c0_13 = arith.constant 0 : index
      %13 = vector.load %arg4[%c0_12, %c0_13] : memref<1x128xf32, #tpu.memory_space<vmem>>, vector<1x128xf32>
      %14 = vector.broadcast %13 : vector<1x128xf32> to vector<16x128xf32>
      %15 = arith.addf %12, %14 : vector<16x128xf32>
      %cst_14 = arith.constant 0.000000e+00 : f32
      %16 = vector.broadcast %cst_14 : f32 to vector<16x128xf32>
      %17 = arith.maximumf %15, %16 : vector<16x128xf32>
      %18 = arith.truncf %17 : vector<16x128xf32> to vector<16x128xbf16>
      %c0_15 = arith.constant 0 : index
      %c0_16 = arith.constant 0 : index
      %19 = vector.load %arg5[%c0_15, %c0_16] : memref<128x128xbf16, #tpu.memory_space<vmem>>, vector<128x128xbf16>
      %cst_17 = arith.constant dense<0.000000e+00> : vector<16x128xf32>
      %20 = tpu.matmul %18, %19, %cst_17 {dimension_numbers = #tpu.dot_dimension_numbers<[1], [0], [0], [1], [0, 0, 1, 1], [], []>} : vector<16x128xbf16>, vector<128x128xbf16>, vector<16x128xf32> -> vector<16x128xf32>
      %c0_18 = arith.constant 0 : index
      %c0_19 = arith.constant 0 : index
      %21 = vector.load %arg6[%c0_18, %c0_19] : memref<1x128xf32, #tpu.memory_space<vmem>>, vector<1x128xf32>
      %22 = vector.broadcast %21 : vector<1x128xf32> to vector<16x128xf32>
      %23 = arith.addf %20, %22 : vector<16x128xf32>
      %c0_20 = arith.constant 0 : index
      %c0_21 = arith.constant 0 : index
      %24 = vector.load %arg7[%c0_20, %c0_21] : memref<16x128xf32, #tpu.memory_space<vmem>>, vector<16x128xf32>
      tpu.vector_store %arg7[%c0_20, %c0_21], %23 {strides = array<i32>} : memref<16x128xf32, #tpu.memory_space<vmem>>, vector<16x128xf32>,
    } else {
    }
    return
  }
  func.func @transform_0(%arg0: i32, %arg1: i32) -> (i32, i32) {
    %c0_i32 = arith.constant 0 : i32
    return %arg0, %arg1 : i32, i32
  }
  func.func @transform_1(%arg0: i32, %arg1: i32) -> (i32, i32) {
    %c0_i32 = arith.constant 0 : i32
    %c0_i32_0 = arith.constant 0 : i32
    return %arg1, %c0_i32 : i32, i32
  }
  func.func @transform_2(%arg0: i32, %arg1: i32) -> (i32, i32) {
    %c0_i32 = arith.constant 0 : i32
    %c0_i32_0 = arith.constant 0 : i32
    %c0_i32_1 = arith.constant 0 : i32
    return %c0_i32, %c0_i32_0 : i32, i32
  }
  func.func @transform_3(%arg0: i32, %arg1: i32) -> (i32, i32) {
    %c0_i32 = arith.constant 0 : i32
    %c0_i32_0 = arith.constant 0 : i32
    %c0_i32_1 = arith.constant 0 : i32
    return %c0_i32, %c0_i32_0 : i32, i32
  }
  func.func @transform_4(%arg0: i32, %arg1: i32) -> (i32, i32) {
    %c0_i32 = arith.constant 0 : i32
    %c0_i32_0 = arith.constant 0 : i32
    %c0_i32_1 = arith.constant 0 : i32
    return %c0_i32, %c0_i32_0 : i32, i32
  }
  func.func @transform_5(%arg0: i32, %arg1: i32) -> (i32, i32) {
    %c0_i32 = arith.constant 0 : i32
    %c0_i32_0 = arith.constant 0 : i32
    return %arg0, %c0_i32 : i32, i32
  }
}

</mosaic_0001>

<bundles_post_ra>
// kernel: tpu_custom_call.1
= control target key start
LH: loop header
LB: loop body
LE: loop exit
PB: predicated region body
PF: predicated region fallthrough
CT: control target
= control target key end

     0   :  { %10 = vsyncpa [#allocation4], 0  ;;  %s1442_s0 = inlined_call_operand.hbm [shape: bf16[16,1024], index: 0, kind: input, shape index: {}]   ;;  %s1443_s1 = inlined_call_operand.hbm [shape: bf16[1024,128], index: 1, kind: input, shape index: {}]   ;;  %s1444_s2 = inlined_call_operand.vmem [shape: f32[1,128], index: 2, kind: input, shape index: {}]   ;;  %s1445_s3 = inlined_call_operand.hbm [shape: bf16[128,128], index: 3, kind: input, shape index: {}]   ;;  %s1446_s4 = inlined_call_operand.vmem [shape: f32[1,128], index: 4, kind: input, shape index: {}]   ;;  %s1447_s5 = inlined_call_operand.hbm [shape: f32[16,128], index: 5, kind: output, shape index: {}]  }
   0x1   :  { %11 = vsyncpa [#allocation7], 0  ;;  %s30_s20 = sshll.u32 %s1443_s1, 4  ;;  %s31_s20 = int_to_ptr.hbm [resolvable:$true] %s30_s20 }
   0x2   :  { %12 = vsyncpa [#allocation5], 0  ;;  %s1384_s21 = smov [#allocation6]   ;;  %s17_s25 = sshll.u32 %s1442_s0, 4  ;;  %s18_s25 = int_to_ptr.hbm [resolvable:$true] %s17_s25 }
   0x3   :  { %s32_s22 = sshll.u32 %s1384_s21, 4  ;;  %s1385_s26 = smov 64   ;;  %s33_s22 = int_to_ptr.vmem [resolvable:$true] %s32_s22 }
   0x4   :  { %s1386_s27 = smov 4   ;;  %s1387_s28 = smov [#allocation3]  }
   0x5   :  { %38 = dma.hbm_to_vmem [thread:$0]  %s31_s20, 8192, %s33_s22, [#allocation7], %s1385_s26, %s1385_s26, %s1386_s27  }
   0x6   :  { %s19_s29 = sshll.u32 %s1387_s28, 4  ;;  %s1388_s30 = smov 512   ;;  %s20_s29 = int_to_ptr.vmem [resolvable:$true] %s19_s29 }
   0x7   :  { %s1389_s6 = smov 32   ;;  %s45_s8 = sshll.u32 %s1445_s3, 4  ;;  %s46_s8 = int_to_ptr.hbm [resolvable:$true] %s45_s8 }
   0x8   :  { %25 = dma.hbm_to_vmem [thread:$0]  %s18_s25, 1024, %s20_s29, [#allocation4], %s1388_s30, %s1388_s30, %s1389_s6  }
   0x9   :  { %s1390_s9 = smov [#allocation8]  }
   0xa   :  { %s47_s10 = sshll.u32 %s1390_s9, 4  ;;  %s48_s10 = int_to_ptr.vmem [resolvable:$true] %s47_s10 }
   0xb   :  { %53 = dma.hbm_to_vmem [thread:$0]  %s46_s8, 1024, %s48_s10, [#allocation7], %s1385_s26, %s1385_s26, %s1386_s27  }
   0xc   :  { %1378 = dma.done.wait [#allocation4], 1024  }
   0xd   :  { %1379 = vsyncadd [#allocation4], 4294966272 }
   0xe   :  { %1380 = dma.done.wait [#allocation7], 9216  }
   0xf   :  { %1381 = vsyncadd [#allocation7], 4294958080  ;;  %v1205_v0 = vld [vmem:[#allocation6 + $0x38] sm:$0xff]  ;;  %v1204_v4 = vld [vmem:[#allocation6 + $0x30] sm:$0xff]  ;;  %s1391_s13 = smov [#allocation9]   ;;  %s856_s16 = sshll.u32 %s1447_s5, 4  ;;  %s857_s16 = int_to_ptr.hbm [resolvable:$true] %s856_s16 }
  0x10   :  { %v1213_v1 = vld [vmem:[#allocation6 + $0x78] sm:$0xff]  ;;  %636 = vmatpush.bf16.msra.mxu0 %v1205_v0  ;;  %v1212_v5 = vld [vmem:[#allocation6 + $0x70] sm:$0xff]  ;;  %v1203_v8 = vld [vmem:[#allocation6 + $0x28] sm:$0xff]  ;;  %s1392_s17 = smov 128   ;;  %s1393_s18 = smov 8  }
  0x11   :  { %v1221_v2 = vld [vmem:[#allocation6 + $0xb8] sm:$0xff]  ;;  %650 = vmatpush.bf16.msra.mxu1 %v1213_v1  ;;  %v1220_v6 = vld [vmem:[#allocation6 + $0xb0] sm:$0xff]  ;;  %v1211_v9 = vld [vmem:[#allocation6 + $0x68] sm:$0xff] }
  0x12   :  { %v1229_v3 = vld [vmem:[#allocation6 + $0xf8] sm:$0xff]  ;;  %664 = vmatpush.bf16.msra.mxu2 %v1221_v2  ;;  %v1228_v7 = vld [vmem:[#allocation6 + $0xf0] sm:$0xff]  ;;  %v1219_v10 = vld [vmem:[#allocation6 + $0xa8] sm:$0xff] }
  0x13   :  { %678 = vmatpush.bf16.msra.mxu3 %v1229_v3  ;;  %v1227_v11 = vld [vmem:[#allocation6 + $0xe8] sm:$0xff]  ;;  %v1202_v12 = vld [vmem:[#allocation6 + $0x20] sm:$0xff]  ;;  %v1201_v16 = vld [vmem:[#allocation6 + $0x18] sm:$0xff] }
  0x14   :  { %637 = vmatpush.bf16.msra.mxu0 %v1204_v4  ;;  %v1210_v13 = vld [vmem:[#allocation6 + $0x60] sm:$0xff]  ;;  %v1209_v17 = vld [vmem:[#allocation6 + $0x58] sm:$0xff]  ;;  %v1200_v20 = vld [vmem:[#allocation6 + $0x10] sm:$0xff] }
  0x15   :  { %651 = vmatpush.bf16.msra.mxu1 %v1212_v5  ;;  %v1218_v14 = vld [vmem:[#allocation6 + $0xa0] sm:$0xff]  ;;  %v1217_v18 = vld [vmem:[#allocation6 + $0x98] sm:$0xff]  ;;  %v1208_v21 = vld [vmem:[#allocation6 + $0x50] sm:$0xff] }
  0x16   :  { %665 = vmatpush.bf16.msra.mxu2 %v1220_v6  ;;  %v1226_v15 = vld [vmem:[#allocation6 + $0xe0] sm:$0xff]  ;;  %v1225_v19 = vld [vmem:[#allocation6 + $0xd8] sm:$0xff]  ;;  %v1216_v22 = vld [vmem:[#allocation6 + $0x90] sm:$0xff] }
  0x17   :  { %679 = vmatpush.bf16.msra.mxu3 %v1228_v7  ;;  %v1224_v23 = vld [vmem:[#allocation6 + $0xd0] sm:$0xff]  ;;  %v1199_v24 = vld [vmem:[#allocation6 + $0x8] sm:$0xff]  ;;  %v1198_v28 = vld [vmem:[#allocation6] sm:$0xff] }
  0x18   :  { %638 = vmatpush.bf16.msra.mxu0 %v1203_v8  ;;  %v1207_v25 = vld [vmem:[#allocation6 + $0x48] sm:$0xff]  ;;  %v1206_v29 = vld [vmem:[#allocation6 + $0x40] sm:$0xff]  ;;  %v1237_v32 = vld [vmem:[#allocation6 + $0x138] sm:$0xff] }
  0x19   :  { %652 = vmatpush.bf16.msra.mxu1 %v1211_v9  ;;  %v1215_v26 = vld [vmem:[#allocation6 + $0x88] sm:$0xff]  ;;  %v1214_v30 = vld [vmem:[#allocation6 + $0x80] sm:$0xff]  ;;  %v1245_v33 = vld [vmem:[#allocation6 + $0x178] sm:$0xff] }
  0x1a   :  { %666 = vmatpush.bf16.msra.mxu2 %v1219_v10  ;;  %v1223_v27 = vld [vmem:[#allocation6 + $0xc8] sm:$0xff]  ;;  %v1222_v31 = vld [vmem:[#allocation6 + $0xc0] sm:$0xff]  ;;  %v1253_v42 = vld [vmem:[#allocation6 + $0x1b8] sm:$0xff] }
  0x1b   :  { %680 = vmatpush.bf16.msra.mxu3 %v1227_v11  ;;  %v880_v34 = vld [vmem:[#allocation3 + $0x8] sm:$0xf]  ;;  %v1191_v36 = vld [vmem:[#allocation3 + $0xc] sm:$0xf]  ;;  %v872_v38 = vld [vmem:[#allocation3] sm:$0xf] }
  0x1c   :  { %639 = vmatpush.bf16.msra.mxu0 %v1202_v12  ;;  %v1195_v35 = vld [vmem:[#allocation3 + $0x24] sm:$0xf0]  ;;  %v882_v37 = vld [vmem:[#allocation3 + $0x28] sm:$0xf0]  ;;  %v1194_v39 = vld [vmem:[#allocation3 + $0x1c] sm:$0xf0] }
  0x1d   :  { %653 = vmatpush.bf16.msra.mxu1 %v1210_v13  ;;  %v1190_v40 = vld [vmem:[#allocation3 + $0x4] sm:$0xf]  ;;  %v1261_v43 = vld [vmem:[#allocation6 + $0x1f8] sm:$0xff]  ;;  %v881_v44 = vor.u32 %v1195_v35, %v880_v34  ;;  %v885_v45 = vor.u32 %v1191_v36, %v882_v37  ;;  %v873_v46 = vor.u32 %v1194_v39, %v872_v38  ;;  %v1236_v48 = vld [vmem:[#allocation6 + $0x130] sm:$0xff] }
  0x1e   :  { %667 = vmatpush.bf16.msra.mxu2 %v1218_v14  ;;  %v874_v41 = vld [vmem:[#allocation3 + $0x20] sm:$0xf0]  ;;  %v1244_v49 = vld [vmem:[#allocation6 + $0x170] sm:$0xff]  ;;  %v1235_v52 = vld [vmem:[#allocation6 + $0x128] sm:$0xff] }
  0x1f   :  { %681 = vmatpush.bf16.msra.mxu3 %v1226_v15  ;;  %v877_v47 = vor.u32 %v1190_v40, %v874_v41  ;;  %v1252_v50 = vld [vmem:[#allocation6 + $0x1b0] sm:$0xff]  ;;  %v1243_v53 = vld [vmem:[#allocation6 + $0x168] sm:$0xff]  ;;  %v1234_v56 = vld [vmem:[#allocation6 + $0x120] sm:$0xff] }
  0x20   :  { %640 = vmatpush.bf16.msra.mxu0 %v1201_v16  ;;  %v1260_v51 = vld [vmem:[#allocation6 + $0x1f0] sm:$0xff]  ;;  %v1251_v54 = vld [vmem:[#allocation6 + $0x1a8] sm:$0xff]  ;;  %v1242_v57 = vld [vmem:[#allocation6 + $0x160] sm:$0xff] }
  0x21   :  { %654 = vmatpush.bf16.msra.mxu1 %v1209_v17  ;;  %v1259_v55 = vld [vmem:[#allocation6 + $0x1e8] sm:$0xff]  ;;  %v1250_v58 = vld [vmem:[#allocation6 + $0x1a0] sm:$0xff]  ;;  %v1233_v60 = vld [vmem:[#allocation6 + $0x118] sm:$0xff] }
  0x22   :  { %668 = vmatpush.bf16.msra.mxu2 %v1217_v18  ;;  %v1258_v59 = vld [vmem:[#allocation6 + $0x1e0] sm:$0xff]  ;;  %v1241_v61 = vld [vmem:[#allocation6 + $0x158] sm:$0xff]  ;;  %v1232_v0 = vld [vmem:[#allocation6 + $0x110] sm:$0xff] }
  0x23   :  { %682 = vmatpush.bf16.msra.mxu3 %v1225_v19  ;;  %v1249_v62 = vld [vmem:[#allocation6 + $0x198] sm:$0xff]  ;;  %v1240_v1 = vld [vmem:[#allocation6 + $0x150] sm:$0xff]  ;;  %v1231_v4 = vld [vmem:[#allocation6 + $0x108] sm:$0xff] }
  0x24   :  { %641 = vmatpush.bf16.msra.mxu0 %v1200_v20  ;;  %v1257_v63 = vld [vmem:[#allocation6 + $0x1d8] sm:$0xff]  ;;  %v1248_v2 = vld [vmem:[#allocation6 + $0x190] sm:$0xff]  ;;  %v1239_v5 = vld [vmem:[#allocation6 + $0x148] sm:$0xff] }
  0x25   :  { %655 = vmatpush.bf16.msra.mxu1 %v1208_v21  ;;  %v1256_v3 = vld [vmem:[#allocation6 + $0x1d0] sm:$0xff]  ;;  %v1247_v6 = vld [vmem:[#allocation6 + $0x188] sm:$0xff]  ;;  %v1230_v8 = vld [vmem:[#allocation6 + $0x100] sm:$0xff] }
  0x26   :  { %669 = vmatpush.bf16.msra.mxu2 %v1216_v22  ;;  %v1255_v7 = vld [vmem:[#allocation6 + $0x1c8] sm:$0xff]  ;;  %v1238_v9 = vld [vmem:[#allocation6 + $0x140] sm:$0xff]  ;;  %v888_v12 = vld [vmem:[#allocation3 + $0x10] sm:$0xf] }
  0x27   :  { %683 = vmatpush.bf16.msra.mxu3 %v1224_v23  ;;  %v1246_v10 = vld [vmem:[#allocation6 + $0x180] sm:$0xff]  ;;  %v1196_v13 = vld [vmem:[#allocation3 + $0x2c] sm:$0xf0]  ;;  %v1192_v14 = vld [vmem:[#allocation3 + $0x14] sm:$0xf] }
  0x28   :  { %642 = vmatpush.bf16.msra.mxu0 %v1199_v24  ;;  %v1254_v11 = vld [vmem:[#allocation6 + $0x1c0] sm:$0xff]  ;;  %v890_v15 = vld [vmem:[#allocation3 + $0x30] sm:$0xf0]  ;;  %v896_v16 = vld [vmem:[#allocation3 + $0x18] sm:$0xf]  ;;  %v889_v20 = vor.u32 %v1196_v13, %v888_v12 }
  0x29   :  { %656 = vmatpush.bf16.msra.mxu1 %v1207_v25  ;;  %v1197_v17 = vld [vmem:[#allocation3 + $0x34] sm:$0xf0]  ;;  %v1193_v18 = vld [vmem:[#allocation3 + $0x1c] sm:$0xf]  ;;  %v893_v21 = vor.u32 %v1192_v14, %v890_v15  ;;  %v1268_v25 = vld [vmem:[#allocation8 + $0x30] sm:$0xff] }
  0x2a   :  { %670 = vmatpush.bf16.msra.mxu2 %v1215_v26  ;;  %v898_v19 = vld [vmem:[#allocation3 + $0x38] sm:$0xf0]  ;;  %v897_v22 = vor.u32 %v1197_v17, %v896_v16  ;;  %v1267_v26 = vld [vmem:[#allocation8 + $0x28] sm:$0xff]  ;;  %v1262_v35 = vld [vmem:[#allocation8] sm:$0xff] }
  0x2b   :  { %684 = vmatpush.bf16.msra.mxu3 %v1223_v27  ;;  %v901_v23 = vor.u32 %v1193_v18, %v898_v19  ;;  %v1269_v24 = vld [vmem:[#allocation8 + $0x38] sm:$0xff]  ;;  %v1266_v27 = vld [vmem:[#allocation8 + $0x20] sm:$0xff] }
  0x2c   :  { %643 = vmatpush.bf16.msra.mxu0 %v1198_v28  ;;  %v1265_v28 = vld [vmem:[#allocation8 + $0x18] sm:$0xff] }
  0x2d   :  { %657 = vmatpush.bf16.msra.mxu1 %v1206_v29  ;;  %v1264_v29 = vld [vmem:[#allocation8 + $0x10] sm:$0xff] }
  0x2e   :  { %671 = vmatpush.bf16.msra.mxu2 %v1214_v30 }
  0x2f   :  { %685 = vmatpush.bf16.msra.mxu3 %v1222_v31  ;;  %644 = vmatmul.bf16.vlgmr.msra.gmra.mxu0 %v873_v46 }
  0x30   :  { %692 = vmatpush.bf16.msrb.mxu0 %v1237_v32  ;;  %658 = vmatmul.bf16.vlgmr.msra.gmra.mxu1 %v877_v47  ;;  %v1263_v32 = vld [vmem:[#allocation8 + $0x8] sm:$0xff] }
  0x31   :  { %706 = vmatpush.bf16.msrb.mxu1 %v1245_v33  ;;  %672 = vmatmul.bf16.vlgmr.msra.gmra.mxu2 %v881_v44 }
  0x32   :  { %720 = vmatpush.bf16.msrb.mxu2 %v1253_v42  ;;  %686 = vmatmul.bf16.vlgmr.msra.gmra.mxu3 %v885_v45 }
  0x33   :  { %734 = vmatpush.bf16.msrb.mxu3 %v1261_v43 }
  0x34   :  { %693 = vmatpush.bf16.msrb.mxu0 %v1236_v48 }
  0x35   :  { %707 = vmatpush.bf16.msrb.mxu1 %v1244_v49 }
  0x36   :  { %721 = vmatpush.bf16.msrb.mxu2 %v1252_v50 }
  0x37   :  { %735 = vmatpush.bf16.msrb.mxu3 %v1260_v51 }
  0x38   :  { %694 = vmatpush.bf16.msrb.mxu0 %v1235_v52 }
  0x39   :  { %708 = vmatpush.bf16.msrb.mxu1 %v1243_v53 }
  0x3a   :  { %722 = vmatpush.bf16.msrb.mxu2 %v1251_v54 }
  0x3b   :  { %736 = vmatpush.bf16.msrb.mxu3 %v1259_v55 }
  0x3c   :  { %695 = vmatpush.bf16.msrb.mxu0 %v1234_v56 }
  0x3d   :  { %709 = vmatpush.bf16.msrb.mxu1 %v1242_v57  ;;  %v1280_v57 = vld [vmem:[%s1444_s2] ss:$0 sm:$0xff]  ;;  %s854_s2 = sshll.u32 %s1391_s13, 4  ;;  %s855_s2 = int_to_ptr.vmem [resolvable:$true] %s854_s2 }
  0x3e   :  { %723 = vmatpush.bf16.msrb.mxu2 %v1250_v58 }
  0x3f   :  { %737 = vmatpush.bf16.msrb.mxu3 %v1258_v59 }
  0x40   :  { %696 = vmatpush.bf16.msrb.mxu0 %v1233_v60 }
  0x41   :  { %710 = vmatpush.bf16.msrb.mxu1 %v1241_v61 }
  0x42   :  { %724 = vmatpush.bf16.msrb.mxu2 %v1249_v62 }
  0x43   :  { %738 = vmatpush.bf16.msrb.mxu3 %v1257_v63 }
  0x44   :  { %697 = vmatpush.bf16.msrb.mxu0 %v1232_v0 }
  0x45   :  { %711 = vmatpush.bf16.msrb.mxu1 %v1240_v1 }
  0x46   :  { %725 = vmatpush.bf16.msrb.mxu2 %v1248_v2 }
  0x47   :  { %739 = vmatpush.bf16.msrb.mxu3 %v1256_v3 }
  0x48   :  { %698 = vmatpush.bf16.msrb.mxu0 %v1231_v4  ;;  %v1281_v4 = vld [vmem:[%s1446_s4] ss:$0 sm:$0xff] }
  0x49   :  { %712 = vmatpush.bf16.msrb.mxu1 %v1239_v5 }
  0x4a   :  { %726 = vmatpush.bf16.msrb.mxu2 %v1247_v6 }
  0x4b   :  { %740 = vmatpush.bf16.msrb.mxu3 %v1255_v7 }
  0x4c   :  { %699 = vmatpush.bf16.msrb.mxu0 %v1230_v8 }
  0x4d   :  { %713 = vmatpush.bf16.msrb.mxu1 %v1238_v9 }
  0x4e   :  { %727 = vmatpush.bf16.msrb.mxu2 %v1246_v10 }
  0x4f   :  { %741 = vmatpush.bf16.msrb.mxu3 %v1254_v11  ;;  %700 = vmatmul.bf16.vlgmr.msrb.gmra.mxu0 %v889_v20 }
  0x50   :  { %714 = vmatmul.bf16.vlgmr.msrb.gmra.mxu1 %v893_v21  ;;  %834 = vmatpush.bf16.msra.mxu0 %v1269_v24 }
  0x51   :  { %728 = vmatmul.bf16.vlgmr.msrb.gmra.mxu2 %v897_v22 }
  0x52   :  { %742 = vmatmul.bf16.vlgmr.msrb.gmra.mxu3 %v901_v23 }
  0x54   :  { %835 = vmatpush.bf16.msra.mxu0 %v1268_v25 }
  0x58   :  { %836 = vmatpush.bf16.msra.mxu0 %v1267_v26 }
  0x5c   :  { %837 = vmatpush.bf16.msra.mxu0 %v1266_v27 }
  0x60   :  { %838 = vmatpush.bf16.msra.mxu0 %v1265_v28 }
  0x64   :  { %839 = vmatpush.bf16.msra.mxu0 %v1264_v29 }
  0x68   :  { %840 = vmatpush.bf16.msra.mxu0 %v1263_v32 }
  0x6c   :  { %841 = vmatpush.bf16.msra.mxu0 %v1262_v35 }
  0xac   :  { %v645_v30 = vpop.f32.mrf.mxu0 }
  0xad   :  { %v659_v31 = vpop.f32.mrf.mxu1 }
  0xae   :  { %v660_v37 = vadd.f32 %v659_v31, %v645_v30 }
  0xb4   :  { %v673_v33 = vpop.f32.mrf.mxu2  ;;  %v647_v36 = vpop.f32.mrf.mxu0 }
  0xb5   :  { %v687_v34 = vpop.f32.mrf.mxu3  ;;  %v661_v38 = vpop.f32.mrf.mxu1  ;;  %v674_v39 = vadd.f32 %v673_v33, %v660_v37 }
  0xb6   :  { %v662_v42 = vadd.f32 %v661_v38, %v647_v36 }
  0xb7   :  { %v688_v44 = vadd.f32 %v687_v34, %v674_v39 }
  0xbc   :  { %v675_v40 = vpop.f32.mrf.mxu2 }
  0xbd   :  { %v689_v41 = vpop.f32.mrf.mxu3  ;;  %v676_v46 = vadd.f32 %v675_v40, %v662_v42 }
  0xbf   :  { %v690_v50 = vadd.f32 %v689_v41, %v676_v46 }
  0xcc   :  { %v701_v43 = vpop.f32.mrf.mxu0 }
  0xcd   :  { %v715_v45 = vpop.f32.mrf.mxu1  ;;  %v702_v47 = vadd.f32 %v701_v43, %v688_v44 }
  0xcf   :  { %v716_v51 = vadd.f32 %v715_v45, %v702_v47 }
  0xd4   :  { %v729_v48 = vpop.f32.mrf.mxu2  ;;  %v703_v52 = vpop.f32.mrf.mxu0 }
  0xd5   :  { %v743_v49 = vpop.f32.mrf.mxu3  ;;  %v730_v53 = vadd.f32 %v729_v48, %v716_v51  ;;  %v704_v54 = vadd.f32 %v703_v52, %v690_v50  ;;  %v717_v55 = vpop.f32.mrf.mxu1 }
  0xd7   :  { %v744_v56 = vadd.f32 %v743_v49, %v730_v53  ;;  %v718_v58 = vadd.f32 %v717_v55, %v704_v54 }
  0xd9   :  { %v761_v62 = vadd.f32 %v1280_v57, %v744_v56 }
  0xdb   :  { %v763_v1 = vmax.f32 %v761_v62, 0.0 }
  0xdc   :  { %v731_v59 = vpop.f32.mrf.mxu2 }
  0xdd   :  { %v732_v60 = vadd.f32 %v731_v59, %v718_v58  ;;  %v745_v61 = vpop.f32.mrf.mxu3 }
  0xdf   :  { %v746_v63 = vadd.f32 %v745_v61, %v732_v60 }
  0xe1   :  { %v762_v0 = vadd.f32 %v1280_v57, %v746_v63 }
  0xe3   :  { %v764_v2 = vmax.f32 %v762_v0, 0.0 }
  0xe5   :  { %v765_v3 = vpack.c.bf16 %v764_v2, %v763_v1 }
  0xe7   :  { %842 = vmatmul.bf16.vlgmr.msra.gmra.mxu0 %v765_v3 }
 0x164   :  { %v843_v5 = vpop.f32.mrf.mxu0 }
 0x165   :  { %v844_v6 = vadd.f32 %v1281_v4, %v843_v5 }
 0x167   :  { %848 = vst [vmem:[#allocation9] sm:$0xff] %v844_v6 }
 0x16c   :  { %v845_v7 = vpop.f32.mrf.mxu0 }
 0x16d   :  { %v846_v8 = vadd.f32 %v1281_v4, %v845_v7 }
 0x16f   :  { %849 = vst [vmem:[#allocation9 + $0x8] sm:$0xff] %v846_v8 }
 0x170   :  { %862 = dma.vmem_to_hbm [thread:$0]  %s855_s2, 256, %s857_s16, [#allocation5], %s1392_s17, %s1392_s17, %s1393_s18  }
 0x171   :  { %1382 = dma.done.wait [#allocation5], 256  }
 0x172   :  { %1383 = vsyncadd [#allocation5], 4294967040 }
 0x173   :  { %867 = vsyncpa [#allocation4], 1 }
 0x174   :  { %868 = vsyncpa [#allocation7], 1 }
 0x175   :  { %869 = vsyncpa [#allocation5], 1 }

</bundles_post_ra>
